<compile_context>
chip_gen: v5e
topology: v5e:2x2
jax: 0.10.0
libtpu: 0.0.40
codegen_flags: <defaults>
</compile_context>

<pallas_src>
import functools

import jax
import jax.numpy as jnp
from jax import lax
from jax.experimental import pallas as pl
from jax.experimental.pallas import tpu as pltpu

_LANE = 128


def _channel_attention_kernel(x_ref, scale_ref, shift_ref, o_ref, acc_ref, *,
                              hw_total, hw_tile, sub_lanes):
    # x_ref:     (1, C_TILE, HW_TILE)        current input tile in VMEM
    # scale_ref: (C_TILE, 1)                 gamma / sqrt(var + eps) / HW   (1/HW folded in)
    # shift_ref: (C_TILE, 1)                 beta - running_mean * gamma / sqrt(var + eps)
    # o_ref:     (1, C_TILE, 1)              resident across the HW grid axis
    # acc_ref:   (1, C_TILE, sub_lanes) f32  lane-wide partial-sum accumulator
    hw_i = pl.program_id(2)
    last_step = pl.num_programs(2) - 1

    @pl.when(hw_i == 0)
    def _init():
        acc_ref[...] = jnp.zeros_like(acc_ref)

    n_sub = hw_tile // sub_lanes                       # static
    num_steps = (hw_total + hw_tile - 1) // hw_tile    # static
    last_start = (num_steps - 1) * hw_tile             # static
    tail_valid = hw_total - last_start                 # static, in (0, hw_tile]
    has_tail = (hw_total % hw_tile) != 0               # static Python bool

    def _add_full_chunks(acc, n_chunks):
        # Accumulate `n_chunks` fully-valid sub_lanes-wide chunks (static count, dynamic index).
        # Per-chunk load + cast -> pure VPU adds; accumulator stays in vregs across the loop.
        if n_chunks <= 0:
            return acc

        def body(k, a):
            start = pl.multiple_of(k * sub_lanes, sub_lanes)
            c = x_ref[:, :, pl.ds(start, sub_lanes)].astype(jnp.float32)
            return a + c

        unroll = n_chunks if n_chunks <= 8 else 8
        return lax.fori_loop(0, n_chunks, body, acc, unroll=unroll)

    if has_tail:
        @pl.when(hw_i != last_step)
        def _plain():
            acc_ref[...] = _add_full_chunks(acc_ref[...], n_sub)

        @pl.when(hw_i == last_step)
        def _tail():
            n_full = tail_valid // sub_lanes            # static
            rem = tail_valid % sub_lanes                # static
            acc = _add_full_chunks(acc_ref[...], n_full)
            if rem:                                     # single partially-valid chunk, masked
                start = n_full * sub_lanes
                c = x_ref[:, :, start:start + sub_lanes].astype(jnp.float32)
                lane = lax.broadcasted_iota(jnp.int32, c.shape, 2)
                acc = acc + jnp.where(lane < rem, c, 0.0)
            # chunks beyond n_full (+rem) are fully out of range -> never loaded
            acc_ref[...] = acc
    else:
        acc_ref[...] = _add_full_chunks(acc_ref[...], n_sub)

    @pl.when(hw_i == last_step)
    def _finalize():
        s = jnp.sum(acc_ref[...], axis=-1, keepdims=True)   # single XLU lane reduce -> (1, C_TILE, 1)
        y = s * scale_ref[...] + shift_ref[...]              # folded BN(eval) affine (incl. 1/HW)
        o_ref[...] = jnp.maximum(y, 0.0).astype(o_ref.dtype)


def _vmem_budget():
    try:
        cap = int(pltpu.get_tpu_info().vmem_capacity_bytes)
    except Exception:
        cap = 64 * 1024 * 1024  # conservative fallback (v7x per-TC physical VMEM)
    # Per-input-block budget: ~8 MiB on 128-MiB parts (v5e/v6e), ~5 MiB on 64-MiB parts (v7x).
    block_budget = max(4 << 20, min(8 << 20, cap // 12))
    return block_budget, cap


def _pick_c_tile(C, itemsize):
    # Lane-size channel tile when possible: clean layout and C//128 parallel tiles for large C.
    if C % _LANE == 0:
        return _LANE
    # Otherwise: largest divisor of C that is a multiple of the sublane granule, capped at 256.
    sub_min = max(8, 32 // max(1, itemsize))  # 8 (f32), 16 (bf16), 32 (int8)
    best = 0
    d = sub_min
    while d <= min(C, 256):
        if C % d == 0:
            best = d
        d += sub_min
    return best if best > 0 else C  # small/odd C: full channel dim (block dim == array dim)


def _pick_hw_tile(HW, c_tile, itemsize, block_budget):
    if HW <= _LANE:
        return HW
    budget_lanes = block_budget // max(1, c_tile * itemsize)
    hw_tile = min((HW // _LANE) * _LANE, (budget_lanes // _LANE) * _LANE)
    return max(hw_tile, _LANE)


def channel_attention(x, gamma, beta, running_mean, running_var, eps=1e-5):
    """x: (B, C, H, W) NCHW. Returns (B, C, 1, 1), eval-mode BN semantics, dtype follows x."""
    B, C, H, W = x.shape
    HW = H * W
    x_flat = x.reshape(B, C, HW)
    itemsize = jnp.dtype(x.dtype).itemsize

    block_budget, vmem_cap = _vmem_budget()
    c_tile = _pick_c_tile(C, itemsize)
    hw_tile = _pick_hw_tile(HW, c_tile, itemsize, block_budget)
    sub_lanes = _LANE if hw_tile % _LANE == 0 else hw_tile

    # Fold BN (eval) + 1/HW into a single affine applied at the finalize step.
    inv_std = 1.0 / jnp.sqrt(running_var.astype(jnp.float32) + eps)
    g = gamma.astype(jnp.float32) * inv_std
    scale = (g / HW).reshape(C, 1)
    shift = (beta.astype(jnp.float32) - running_mean.astype(jnp.float32) * g).reshape(C, 1)

    grid = (B, C // c_tile, pl.cdiv(HW, hw_tile))

    block_bytes = c_tile * hw_tile * itemsize
    acc_bytes = c_tile * sub_lanes * 4
    vmem_limit = int(min(vmem_cap // 2,
                         max(16 << 20, 2 * block_bytes + acc_bytes + (8 << 20))))

    kernel = functools.partial(
        _channel_attention_kernel,
        hw_total=HW, hw_tile=hw_tile, sub_lanes=sub_lanes)

    out = pl.pallas_call(
        kernel,
        out_shape=jax.ShapeDtypeStruct((B, C, 1), x.dtype),
        grid_spec=pltpu.PrefetchScalarGridSpec(
            num_scalar_prefetch=0,
            grid=grid,
            in_specs=[
                pl.BlockSpec((1, c_tile, hw_tile), lambda b, ci, hi: (b, ci, hi)),
                pl.BlockSpec((c_tile, 1), lambda b, ci, hi: (ci, 0)),
                pl.BlockSpec((c_tile, 1), lambda b, ci, hi: (ci, 0)),
            ],
            out_specs=pl.BlockSpec((1, c_tile, 1), lambda b, ci, hi: (b, ci, 0)),
            scratch_shapes=[pltpu.VMEM((1, c_tile, sub_lanes), jnp.float32)],
        ),
        compiler_params=pltpu.CompilerParams(
            dimension_semantics=("parallel", "parallel", "arbitrary"),
            vmem_limit_bytes=vmem_limit),
    )(x_flat, scale, shift)

    return out.reshape(B, C, 1, 1)


def _reference(x, gamma, beta, running_mean, running_var, eps=1e-5):
    B, C, H, W = x.shape
    y = jnp.mean(x.astype(jnp.float32), axis=(2, 3))  # (B, C)
    y = (y - running_mean) / jnp.sqrt(running_var + eps) * gamma + beta
    y = jnp.maximum(y, 0.0)
    return y.reshape(B, C, 1, 1)


def _make_inputs(key, B, C, H, W):
    k_x, k_g, k_b, k_m, k_v = jax.random.split(key, 5)
    x = jax.random.normal(k_x, (B, C, H, W), dtype=jnp.float32)
    gamma = 1.0 + 0.1 * jax.random.normal(k_g, (C,), dtype=jnp.float32)
    beta = 0.1 * jax.random.normal(k_b, (C,), dtype=jnp.float32)
    running_mean = 0.05 * jax.random.normal(k_m, (C,), dtype=jnp.float32)
    running_var = 1.0 + 0.1 * jax.random.uniform(k_v, (C,), dtype=jnp.float32)
    return x, gamma, beta, running_mean, running_var


if __name__ == "__main__":
    key = jax.random.PRNGKey(0)
    k0, k1, k2 = jax.random.split(key, 3)

    # Primary small shape consistent with the module.
    args = _make_inputs(k0, 2, 4, 16, 16)
    out = jax.block_until_ready(channel_attention(*args))
    ref = _reference(*args)
    assert out.shape == (2, 4, 1, 1)
    assert jnp.allclose(out, ref, atol=1e-5, rtol=1e-5), "mismatch vs reference (small shape)"

    # Multi-step HW reduction: exercises pl.when init/finalize, the static tail mask
    # (HW=400 -> one 384-lane full step + one masked 16-lane chunk) and a 128-channel tile.
    args2 = _make_inputs(k1, 2, 128, 20, 20)
    out2 = jax.block_until_ready(channel_attention(*args2))
    ref2 = _reference(*args2)
    assert jnp.allclose(out2, ref2, atol=1e-5, rtol=1e-5), "mismatch vs reference (tail-mask path)"

    # Multiple parallel C tiles (C=256 -> 2 tiles) and the HW < 128 single-tile path.
    args3 = _make_inputs(k2, 2, 256, 9, 9)
    out3 = jax.block_until_ready(channel_attention(*args3))
    ref3 = _reference(*args3)
    assert jnp.allclose(out3, ref3, atol=1e-5, rtol=1e-5), "mismatch vs reference (multi C-tile path)"

    print("KERNEL_OK")
</pallas_src>

<mosaic_0001>
module attributes {stable_mosaic.version = 11 : i64} {
  func.func @_channel_attention_kernel(%arg0: i32, %arg1: i32, %arg2: i32, %arg3: memref<1x4x256xf32, #tpu.memory_space<vmem>>, %arg4: memref<4x1xf32, #tpu.memory_space<vmem>>, %arg5: memref<4x1xf32, #tpu.memory_space<vmem>>, %arg6: memref<1x4x1xf32, #tpu.memory_space<vmem>>, %arg7: memref<1x4x128xf32, #tpu.memory_space<vmem>>) attributes {dimension_semantics = [#tpu.dimension_semantics<parallel>, #tpu.dimension_semantics<parallel>, #tpu.dimension_semantics<arbitrary>], iteration_bounds = array<i64: 2, 1, 1>, scalar_prefetch = 0 : i64, scratch_operands = 1 : i64, tpu.core_type = #tpu.core_type<tc>, window_params = [{transform_indices = @transform_0, window_bounds = array<i64: 1, 4, 256>}, {transform_indices = @transform_1, window_bounds = array<i64: 4, 1>}, {transform_indices = @transform_2, window_bounds = array<i64: 4, 1>}, {transform_indices = @transform_3, window_bounds = array<i64: 1, 4, 1>}]} {
    %c0_i32 = arith.constant 0 : i32
    %0 = arith.cmpi eq, %arg2, %c0_i32 : i32
    %1 = arith.extui %0 : i1 to i32
    %c0_i32_0 = arith.constant 0 : i32
    %2 = arith.cmpi ne, %1, %c0_i32_0 : i32
    scf.if %2 {
      %cst = arith.constant 0.000000e+00 : f32
      %18 = vector.broadcast %cst : f32 to vector<1x4x128xf32>
      %c0_14 = arith.constant 0 : index
      %c0_15 = arith.constant 0 : index
      %c0_16 = arith.constant 0 : index
      %19 = vector.load %arg7[%c0_14, %c0_15, %c0_16] : memref<1x4x128xf32, #tpu.memory_space<vmem>>, vector<1x4x128xf32>
      tpu.vector_store %arg7[%c0_14, %c0_15, %c0_16], %18 {strides = array<i32>} : memref<1x4x128xf32, #tpu.memory_space<vmem>>, vector<1x4x128xf32>,
    } else {
    }
    %c0 = arith.constant 0 : index
    %c0_1 = arith.constant 0 : index
    %c0_2 = arith.constant 0 : index
    %3 = vector.load %arg7[%c0, %c0_1, %c0_2] : memref<1x4x128xf32, #tpu.memory_space<vmem>>, vector<1x4x128xf32>
    %c0_i32_3 = arith.constant 0 : i32
    %c128_i32 = arith.constant 128 : i32
    %4 = arith.muli %c0_i32_3, %c128_i32 : i32
    %5 = tpu.assume_multiple %4, 128 : i32
    %c0_4 = arith.constant 0 : index
    %c0_5 = arith.constant 0 : index
    %6 = arith.index_cast %5 : i32 to index
    %7 = vector.load %arg3[%c0_4, %c0_5, %6] : memref<1x4x256xf32, #tpu.memory_space<vmem>>, vector<1x4x128xf32>
    %8 = arith.addf %3, %7 : vector<1x4x128xf32>
    %c1_i32 = arith.constant 1 : i32
    %c128_i32_6 = arith.constant 128 : i32
    %9 = arith.muli %c1_i32, %c128_i32_6 : i32
    %10 = tpu.assume_multiple %9, 128 : i32
    %c0_7 = arith.constant 0 : index
    %c0_8 = arith.constant 0 : index
    %11 = arith.index_cast %10 : i32 to index
    %12 = vector.load %arg3[%c0_7, %c0_8, %11] : memref<1x4x256xf32, #tpu.memory_space<vmem>>, vector<1x4x128xf32>
    %13 = arith.addf %8, %12 : vector<1x4x128xf32>
    %c2_i32 = arith.constant 2 : i32
    %c0_9 = arith.constant 0 : index
    %c0_10 = arith.constant 0 : index
    %c0_11 = arith.constant 0 : index
    %14 = vector.load %arg7[%c0_9, %c0_10, %c0_11] : memref<1x4x128xf32, #tpu.memory_space<vmem>>, vector<1x4x128xf32>
    tpu.vector_store %arg7[%c0_9, %c0_10, %c0_11], %13 {strides = array<i32>} : memref<1x4x128xf32, #tpu.memory_space<vmem>>, vector<1x4x128xf32>,
    %c0_i32_12 = arith.constant 0 : i32
    %15 = arith.cmpi eq, %arg2, %c0_i32_12 : i32
    %16 = arith.extui %15 : i1 to i32
    %c0_i32_13 = arith.constant 0 : i32
    %17 = arith.cmpi ne, %16, %c0_i32_13 : i32
    scf.if %17 {
      %c0_14 = arith.constant 0 : index
      %c0_15 = arith.constant 0 : index
      %c0_16 = arith.constant 0 : index
      %18 = vector.load %arg7[%c0_14, %c0_15, %c0_16] : memref<1x4x128xf32, #tpu.memory_space<vmem>>, vector<1x4x128xf32>
      %cst = arith.constant dense<0.000000e+00> : vector<1x4xf32>
      %19 = vector.multi_reduction <add>, %18, %cst [2] : vector<1x4x128xf32> to vector<1x4xf32>
      %20 = vector.shape_cast %19 : vector<1x4xf32> to vector<1x4x1xf32>
      %c0_17 = arith.constant 0 : index
      %c0_18 = arith.constant 0 : index
      %21 = vector.load %arg4[%c0_17, %c0_18] : memref<4x1xf32, #tpu.memory_space<vmem>>, vector<4x1xf32>
      %22 = vector.shape_cast %21 : vector<4x1xf32> to vector<1x4x1xf32>
      %23 = arith.mulf %20, %22 : vector<1x4x1xf32>
      %c0_19 = arith.constant 0 : index
      %c0_20 = arith.constant 0 : index
      %24 = vector.load %arg5[%c0_19, %c0_20] : memref<4x1xf32, #tpu.memory_space<vmem>>, vector<4x1xf32>
      %25 = vector.shape_cast %24 : vector<4x1xf32> to vector<1x4x1xf32>
      %26 = arith.addf %23, %25 : vector<1x4x1xf32>
      %cst_21 = arith.constant 0.000000e+00 : f32
      %27 = vector.broadcast %cst_21 : f32 to vector<1x4x1xf32>
      %28 = arith.maximumf %26, %27 : vector<1x4x1xf32>
      %c0_22 = arith.constant 0 : index
      %c0_23 = arith.constant 0 : index
      %c0_24 = arith.constant 0 : index
      %29 = vector.load %arg6[%c0_22, %c0_23, %c0_24] : memref<1x4x1xf32, #tpu.memory_space<vmem>>, vector<1x4x1xf32>
      tpu.vector_store %arg6[%c0_22, %c0_23, %c0_24], %28 {strides = array<i32>} : memref<1x4x1xf32, #tpu.memory_space<vmem>>, vector<1x4x1xf32>,
    } else {
    }
    return
  }
  func.func @transform_0(%arg0: i32, %arg1: i32, %arg2: i32) -> (i32, i32, i32) {
    %c0_i32 = arith.constant 0 : i32
    return %arg0, %arg1, %arg2 : i32, i32, i32
  }
  func.func @transform_1(%arg0: i32, %arg1: i32, %arg2: i32) -> (i32, i32) {
    %c0_i32 = arith.constant 0 : i32
    %c0_i32_0 = arith.constant 0 : i32
    return %arg1, %c0_i32 : i32, i32
  }
  func.func @transform_2(%arg0: i32, %arg1: i32, %arg2: i32) -> (i32, i32) {
    %c0_i32 = arith.constant 0 : i32
    %c0_i32_0 = arith.constant 0 : i32
    return %arg1, %c0_i32 : i32, i32
  }
  func.func @transform_3(%arg0: i32, %arg1: i32, %arg2: i32) -> (i32, i32, i32) {
    %c0_i32 = arith.constant 0 : i32
    %c0_i32_0 = arith.constant 0 : i32
    return %arg0, %arg1, %c0_i32 : i32, i32, i32
  }
}

</mosaic_0001>

<bundles_post_ra>
// kernel: tpu_custom_call.1
= control target key start
LH: loop header
LB: loop body
LE: loop exit
PB: predicated region body
PF: predicated region fallthrough
CT: control target
= control target key end

     0   :  { %8 = vsyncpa [#allocation4], 0  ;;  %s676_s0 = inlined_call_operand.hbm [shape: f32[2,4,256], index: 0, kind: input, shape index: {}]   ;;  %s677_s1 = inlined_call_operand.vmem [shape: f32[4,1], index: 1, kind: input, shape index: {}]   ;;  %s678_s2 = inlined_call_operand.vmem [shape: f32[4,1], index: 2, kind: input, shape index: {}]   ;;  %s679_s3 = inlined_call_operand.vmem [shape: f32[2,4,1], index: 3, kind: output, shape index: {}]  }
   0x1   :  { %10 = vsyncpa [#allocation4 + $0x1], 0  ;;  %s582_s12 = smov 0   ;;  %s584_s13 = smov 0  }
   0x2   :  { %s586_s14 = smov 0   ;;  %s588_s15 = smov 0  }
   0x3   :  { %s590_s16 = smov 0   ;;  %s592_s17 = smov 0  }
   0x4 LB: > { %s407_s18 = sadd.s32 4294967295, %s559_s17   ;;  %s35_s19 = sadd.s32 1, %s555_s16  ;;  %s559_s17 = sphi %s592_s17, %s16_s17   ;;  %s555_s16 = sphi %s590_s16, %s686_s16   ;;  %s551_s15 = sphi %s588_s15, %s685_s15   ;;  %s547_s14 = sphi %s586_s14, %s684_s14   ;;  %s543_s13 = sphi %s584_s13, %s683_s13   ;;  %s539_s12 = sphi %s582_s12, %s682_s12  }
   0x5   : > { %p37_p0 = scmp.ge.s32.totalorder %s35_s19, 2  ;;  %s46_s20 = sadd.s32 1, %s547_s14 }
   0x6   : > { %p53_p1 = scmp.ne.s32.totalorder %s547_s14, %s543_s13  ;;  %p54_p2 = scmp.eq.s32.totalorder %s559_s17, 0 }
   0x7   : > { %s688_s19 = smov (%p37_p0, %s35_s19), 0  ;;  %p59_p4 = scmp.ne.s32.totalorder %s543_s13, %s539_s12 }
   0x8   : > { %p618_p3 = por %p54_p2, %p53_p1  ;;  %s39_s22 = ssub.s32 %s555_s16, %s688_s19 }
   0x9   : > { %p60_p5 = scmp.eq.s32.totalorder %s407_s18, 0  ;;  %p44_p6 = scmp.eq.s32.totalorder %s39_s22, 0 }
   0xa   : > { %p429_p8 = scmp.lt.s32.totalorder %s559_s17, 2  ;;  %s177_s25 = sand.u32 1, %s547_s14  }
   0xb   : > { %p625_p7 = por %p60_p5, %p59_p4  ;;  %s422_s26 = sshll.u32 %s555_s16, 3 }
   0xc   : > { %s631_s24 = scalar_select %p44_p6, %s547_s14, %s46_s20  }
   0xd   : > { %s413_s27 = sshll.u32 %s177_s25, 3  ;;  %s190_s30 = scalar_lea.hbm %s676_s0, %s422_s26 }
   0xe   : > { %s192_s4 = sshll.u32 %s190_s30, 4  ;;  %s181_s5 = scalar_lea.vmem [#allocation3], %s413_s27  ;;  %s193_s4 = int_to_ptr.hbm [resolvable:$true] %s192_s4 }
   0xf   : > { %s194_s6 = sshll.u32 %s181_s5, 4  ;;  %p426_p9 = pnand %p429_p8, %p618_p3  ;;  %s195_s6 = int_to_ptr.vmem [resolvable:$true] %s194_s6 }
  0x10   : > { %p416_p10 = scmp.ge.s32.totalorder %s559_s17, 1  ;;  %p199_p11 = scmp.lt.s32.totalorder %s559_s17, 3 }
  0x11   : > { %s178_s7 = scalar_lea.sflag [#allocation4], %s177_s25 }
  0x12   : > { %428 = dma.hbm_to_vmem [thread:$0]  (!%p426_p9), %s193_s4, 128, %s195_s6, %s178_s7  }
  0x13   : > { %p200_p12 = pnand %p416_p10, %p199_p11 }
  0x14   : > { %s205_s8 = sand.u32 (!%p200_p12), 1, %s543_s13  }
  0x15   : > { %203 = sbr.rel (%p200_p12) target bundleno = 172 (0xac), region = 32  ;;  %s417_s9 = sshll.u32 (!%p200_p12), %s205_s8, 3 }
  0x16   : > { %s206_s10 = scalar_lea.sflag (!%p200_p12), [#allocation4], %s205_s8  ;;  %s209_s11 = scalar_lea.vmem (!%p200_p12), [#allocation3], %s417_s9 }
  0x1a   : > { %534 = dma.done.wait (%p625_p7), %s206_s10, 128  }
  0x1b   : > { %536 = vsyncadd (%p625_p7), %s206_s10, 4294967168  ;;  %v561_v0 = vmov 0.0   ;;  %v265_v1 = vld [vmem:[%s209_s11] sm:$0xf]  ;;  %v419_v3 = vld [vmem:[%s209_s11 + $0x4] sm:$0xf] }
  0x1c   : > { %263 = vst [vmem:[#allocation2] sm:$0xf] %v561_v0  ;;  %vm275_vm0 = vcmask 1043456   ;;  %p252_p13 = scmp.lt.s32.totalorder %s551_s15, 1  ;;  %v279_v8 = vld [vmem:[%s677_s1] sm:$0xf] }
  0x1d   : > { %v281_v10 = vld [vmem:[%s678_s2] sm:$0xf]  ;;  %vm284_vm1 = vcmask 3072  }
  0x1e   : > { %s690_s15 = smov (!%p252_p13, %s551_s15), 1 }
  0x1f   : > { %s418_s22 = sshll.u32 %s690_s15, 2 }
  0x20   : > { %s258_s26 = scalar_lea.vmem %s679_s3, %s418_s22 }
  0x23   : > { %v264_v2 = vld [vmem:[#allocation2] sm:$0xf] }
  0x24   : > { %v266_v4 = vadd.f32 %v265_v1, %v264_v2 }
  0x26   : > { %v269_v5 = vadd.f32 %v419_v3, %v266_v4 }
  0x28   : > { %270 = vst [vmem:[#allocation2] sm:$0xf] %v269_v5 }
  0x2f   : > { %v274_v6 = vld [vmem:[#allocation2] sm:$0xf] }
  0x30   : > { %v276_v7 = vsel %vm275_vm0, %v274_v6, 0.0 }
  0x31   : > { %277 = vadd.xlane.f32.xlu0 %v276_v7 }
  0xa4   : > { %v278_v9 = vpop.xlane.xlu0 %277 }
  0xa5   : > { %v280_v11 = vmul.f32 %v279_v8, %v278_v9 }
  0xa7   : > { %v282_v12 = vadd.f32 %v281_v10, %v280_v11 }
  0xa9   : > { %v283_v13 = vmax.f32 %v282_v12, 0.0 }
  0xab   : > { %285 = vst.msk [vmem:[%s258_s26] sm:$0xf] %vm284_vm1, %v283_v13 }
  0xac PF: > { %s16_s17 = sadd.s32 1, %s559_s17   ;;  %s682_s12 = smov %s543_s13 }
  0xad   : > { %p13_p0 = scmp.ge.s32.totalorder %s16_s17, 4   ;;  %s683_s13 = smov %s547_s14 }
  0xae   : > { %s684_s14 = smov %s631_s24  ;;  %s685_s15 = smov %s555_s16 }
  0xaf   : > { %s686_s16 = smov %s688_s19  ;;  %15 = sbr.rel (!%p13_p0) target bundleno = 4 (0x4), region = 87 }
  0xb4   :  { %311 = vsyncpa [#allocation4], 1 }
  0xb5   :  { %313 = vsyncpa [#allocation4 + $0x1], 1 }

</bundles_post_ra>
